<compile_context>
chip_gen: v5e
topology: v5e:2x2
jax: 0.10.0
libtpu: 0.0.40
codegen_flags: <defaults>
</compile_context>

<pallas_src>
import functools

import jax
import jax.numpy as jnp
from jax import lax
from jax.experimental import pallas as pl
from jax.experimental.pallas import tpu as pltpu


# ---------------------------------------------------------------------------
# In-kernel helper: train-mode BatchNorm1d (+ReLU) over a lane-dense slab.
# ---------------------------------------------------------------------------
def _bn_relu_train(z, seg_starts, seg_width, gamma, beta, eps):
    """Batch statistics are taken only over the contiguous per-batch valid
    column ranges [s, s + seg_width) for the static `seg_starts` — no
    per-element mask.  Two-pass (centered) biased variance, exactly
    nn.BatchNorm1d training-mode semantics."""
    inv_cnt = 1.0 / float(len(seg_starts) * seg_width)
    tot = None
    for s in seg_starts:
        p = jnp.sum(z[:, s:s + seg_width], axis=1, keepdims=True)
        tot = p if tot is None else tot + p
    mean = tot * inv_cnt
    sq = None
    for s in seg_starts:
        d = z[:, s:s + seg_width] - mean
        p = jnp.sum(d * d, axis=1, keepdims=True)
        sq = p if sq is None else sq + p
    var = sq * inv_cnt
    scale = gamma * lax.rsqrt(var + eps)
    shift = beta - mean * scale
    return jnp.maximum(z * scale + shift, 0.0)


# ---------------------------------------------------------------------------
# Fused kernel: conv1 + BN + ReLU + conv2 + BN + ReLU + AvgPool, one invocation
# ---------------------------------------------------------------------------
def _block_fcn_kernel(xs_ref, pk_ref, o_ref, *,
                      N, K1, K2, dil, pad2, eps,
                      Tp1, Tout1, Tp2, Tout2, pool, Lp,
                      C0p, C1p, C2p, C2):
    W1cols = K1 * C0p
    W2cols = K2 * C1p
    Lc1 = N * Tp1                       # conv-1 output width (lane-dense slab)
    Lc2 = N * Tp2                       # conv-2 output width
    ext2 = dil * (K2 - 1)

    # ---- block 1: im2col (8-sublane-aligned taps) + ONE MXU matmul ---------
    xs = xs_ref[...]                                     # (C0p, Lc1 + dil*(K1-1))
    taps1 = [xs[:, k * dil: k * dil + Lc1] for k in range(K1)]
    a1 = taps1[0] if K1 == 1 else jnp.concatenate(taps1, axis=0)   # (K1*C0p, Lc1)
    w1 = pk_ref[0:C1p, 0:W1cols]                                   # (C1p, K1*C0p)
    z1 = jnp.dot(w1, a1, preferred_element_type=jnp.float32)       # (C1p, Lc1)
    gb1 = pk_ref[C1p:2 * C1p, 0:2]                                 # packed gamma/beta
    h1 = _bn_relu_train(z1, [n * Tp1 for n in range(N)], Tout1,
                        gb1[:, 0:1], gb1[:, 1:2], eps)

    # ---- block 2: re-pad in registers (no scratch), second matmul ----------
    pieces = []
    zp = jnp.zeros((C1p, pad2), jnp.float32) if pad2 > 0 else None
    for n in range(N):
        if pad2 > 0:
            pieces.append(zp)
        pieces.append(h1[:, n * Tp1: n * Tp1 + Tout1])
        if pad2 > 0:
            pieces.append(zp)
    if ext2 > 0:
        pieces.append(jnp.zeros((C1p, ext2), jnp.float32))
    slab2 = pieces[0] if len(pieces) == 1 else jnp.concatenate(pieces, axis=1)

    taps2 = [slab2[:, k * dil: k * dil + Lc2] for k in range(K2)]
    a2 = taps2[0] if K2 == 1 else jnp.concatenate(taps2, axis=0)   # (K2*C1p, Lc2)
    w2 = pk_ref[2 * C1p: 2 * C1p + C2, 0:W2cols]                   # (C2, K2*C1p)
    z2 = jnp.dot(w2, a2, preferred_element_type=jnp.float32)       # (C2, Lc2)
    gb2 = pk_ref[2 * C1p + C2p: 2 * C1p + C2p + C2, 0:2]
    h2 = _bn_relu_train(z2, [n * Tp2 for n in range(N)], Tout2,
                        gb2[:, 0:1], gb2[:, 1:2], eps)

    # ---- outputs: lane-dense slab [x2 columns | pooled y columns], 1 store --
    x2_parts = [h2[:, n * Tp2: n * Tp2 + Tout2] for n in range(N)]
    y_parts = []
    for n in range(N):
        for l in range(Lp):
            y_parts.append(jnp.mean(x2_parts[n][:, l * pool:(l + 1) * pool],
                                    axis=1, keepdims=True))
    o_ref[...] = jnp.concatenate(x2_parts + y_parts, axis=1)


# ---------------------------------------------------------------------------
# Wrapper: one pallas_call (2 input DMAs, 1 output DMA) for the whole forward.
# ---------------------------------------------------------------------------
@functools.partial(jax.jit,
                   static_argnames=("time_steps", "kernels", "dilation", "eps"))
def block_fcn_forward(x, params, *, time_steps, kernels, dilation, eps=0.001):
    """Equivalent of BlockFCN.forward (training-mode BatchNorm). Returns (x2, y)."""
    w1, gb1, w2, gb2 = params
    N, Cin0, T = x.shape
    C1, C2 = w1.shape[0], w2.shape[0]
    K1, K2 = kernels
    d = dilation
    pad1 = int(d * (K1 - 1) / 2)
    pad2 = int(d * (K2 - 1) / 2)
    Tp1 = T + 2 * pad1
    Tout1 = Tp1 - d * (K1 - 1)
    Tp2 = Tout1 + 2 * pad2
    Tout2 = Tp2 - d * (K2 - 1)
    pool = time_steps - sum(kernels) + len(kernels)       # AvgPool1d kernel size
    Lp = (Tout2 - pool) // pool + 1                       # AvgPool1d output len
    assert pool >= 1 and Lp >= 1, (pool, Lp)

    rup8 = lambda n: ((n + 7) // 8) * 8
    C0p, C1p, C2p = rup8(Cin0), rup8(C1), rup8(C2)
    W1cols, W2cols = K1 * C0p, K2 * C1p
    Wp = max(W1cols, W2cols, 2)                           # packed-params width
    RT = 2 * C1p + 2 * C2p                                # packed-params rows
    ext1 = d * (K1 - 1)

    # -- lane-dense, zero-padded block-1 input slab (layout plumbing in XLA) --
    # column n*Tp1 + j holds padded_x_n[:, j]; channels padded Cin0 -> C0p.
    xpad = jnp.pad(x.astype(jnp.float32),
                   ((0, 0), (0, C0p - Cin0), (pad1, pad1)))        # (N, C0p, Tp1)
    xs = jnp.pad(xpad.transpose(1, 0, 2).reshape(C0p, N * Tp1),
                 ((0, 0), (0, ext1)))                              # (C0p, N*Tp1+ext1)

    # -- pack ALL parameters into one pre-padded operand (single DMA) ---------
    # Flattened conv weights ordered [k, c] with c padded to a multiple of 8 so
    # they match the sublane-aligned im2col row order built in the kernel.
    w1f = jnp.pad(jnp.transpose(w1, (0, 2, 1)),
                  ((0, 0), (0, 0), (0, C0p - Cin0))).reshape(C1, W1cols)
    w2f = jnp.pad(jnp.transpose(w2, (0, 2, 1)),
                  ((0, 0), (0, 0), (0, C1p - C1))).reshape(C2, W2cols)

    def padto(a, r, c):
        return jnp.pad(a, ((0, r - a.shape[0]), (0, c - a.shape[1])))

    pk = jnp.concatenate([padto(w1f.astype(jnp.float32), C1p, Wp),
                          padto(gb1.astype(jnp.float32), C1p, Wp),
                          padto(w2f.astype(jnp.float32), C2p, Wp),
                          padto(gb2.astype(jnp.float32), C2p, Wp)], axis=0)

    Wout = N * Tout2 + N * Lp
    kern = functools.partial(
        _block_fcn_kernel, N=N, K1=K1, K2=K2, dil=d, pad2=pad2, eps=eps,
        Tp1=Tp1, Tout1=Tout1, Tp2=Tp2, Tout2=Tout2, pool=pool, Lp=Lp,
        C0p=C0p, C1p=C1p, C2p=C2p, C2=C2)

    slab = pl.pallas_call(
        kern,
        out_shape=jax.ShapeDtypeStruct((C2, Wout), jnp.float32),
        grid=(1,),
        in_specs=[pl.BlockSpec((C0p, N * Tp1 + ext1), lambda i: (0, 0)),
                  pl.BlockSpec((RT, Wp), lambda i: (0, 0))],
        out_specs=pl.BlockSpec((C2, Wout), lambda i: (0, 0)),
        # BatchNorm couples the whole batch, so the batch cannot become a
        # "parallel" grid axis without changing semantics; grid stays (1,).
        compiler_params=pltpu.CompilerParams(dimension_semantics=("arbitrary",)),
    )(xs, pk)

    # -- unpack the lane-dense slab back to PyTorch NCW layout (pure XLA) -----
    x2 = slab[:, :N * Tout2].reshape(C2, N, Tout2).transpose(1, 0, 2)
    y = slab[:, N * Tout2:].reshape(C2, N, Lp).transpose(1, 0, 2)
    return x2, y


# ---------------------------------------------------------------------------
# Parameters, pure-JAX reference, driver
# ---------------------------------------------------------------------------
def init_params(key, channels, kernels):
    """Conv weights + packed BN (gamma, beta).  Conv bias omitted: it is
    cancelled exactly by the train-mode BatchNorm mean subtraction."""
    k1, k2 = jax.random.split(key)
    c0, c1, c2 = channels
    w1 = 0.1 * jax.random.normal(k1, (c1, c0, kernels[0]), jnp.float32)
    w2 = 0.1 * jax.random.normal(k2, (c2, c1, kernels[1]), jnp.float32)
    gb1 = jnp.concatenate([jnp.ones((c1, 1), jnp.float32),   # gamma (BN default)
                           jnp.zeros((c1, 1), jnp.float32)], axis=1)  # beta
    gb2 = jnp.concatenate([jnp.ones((c2, 1), jnp.float32),
                           jnp.zeros((c2, 1), jnp.float32)], axis=1)
    return (w1, gb1, w2, gb2)


def _reference_forward(x, params, *, time_steps, kernels, dilation, eps):
    """Pure-JAX (XLA) reference of BlockFCN.forward for a correctness check."""
    w1, gb1, w2, gb2 = params

    def conv_bn_relu(x, w, gb, k):
        pad = int(dilation * (k - 1) / 2)
        z = lax.conv_general_dilated(
            jnp.pad(x, ((0, 0), (0, 0), (pad, pad))), w,
            window_strides=(1,), padding="VALID", rhs_dilation=(dilation,),
            dimension_numbers=("NCH", "OIH", "NCH"))
        mean = jnp.mean(z, axis=(0, 2), keepdims=True)
        var = jnp.mean(jnp.square(z - mean), axis=(0, 2), keepdims=True)
        zh = (z - mean) / jnp.sqrt(var + eps)
        return jnp.maximum(gb[:, 0].reshape(1, -1, 1) * zh
                           + gb[:, 1].reshape(1, -1, 1), 0.0)

    x1 = conv_bn_relu(x, w1, gb1, kernels[0])
    x2 = conv_bn_relu(x1, w2, gb2, kernels[1])
    pool = time_steps - sum(kernels) + len(kernels)
    lp = (x2.shape[2] - pool) // pool + 1
    y = jnp.stack([jnp.mean(x2[:, :, i * pool:(i + 1) * pool], axis=2)
                   for i in range(lp)], axis=2)
    return x2, y


if __name__ == "__main__":
    key = jax.random.PRNGKey(0)
    kx, kp = jax.random.split(key)

    # Small shapes consistent with BlockFCN(time_steps, channels, kernels, dilation)
    N = 2
    time_steps = 16
    channels = (4, 8, 16)
    kernels = (5, 3)
    dilation = 1
    eps = 0.001   # BlockFCN default epsilon

    x = jax.random.normal(kx, (N, channels[0], time_steps), jnp.float32)
    params = init_params(kp, channels, kernels)

    x2, y = block_fcn_forward(x, params, time_steps=time_steps,
                              kernels=kernels, dilation=dilation, eps=eps)
    jax.block_until_ready((x2, y))

    assert x2.shape == (N, channels[2], time_steps), x2.shape
    assert y.shape == (N, channels[2], 1), y.shape

    x2_r, y_r = _reference_forward(x, params, time_steps=time_steps,
                                   kernels=kernels, dilation=dilation, eps=eps)
    err = max(float(jnp.max(jnp.abs(x2 - x2_r))),
              float(jnp.max(jnp.abs(y - y_r))))
    assert err < 1e-4, f"mismatch vs pure-JAX reference: {err}"

    print("KERNEL_OK")
</pallas_src>

<mosaic_0001>
module attributes {stable_mosaic.version = 11 : i64} {
  func.func @_block_fcn_kernel(%arg0: i32, %arg1: memref<8x44xf32, #tpu.memory_space<vmem>>, %arg2: memref<48x40xf32, #tpu.memory_space<vmem>>, %arg3: memref<16x34xf32, #tpu.memory_space<vmem>>) attributes {dimension_semantics = [#tpu.dimension_semantics<arbitrary>], iteration_bounds = array<i64: 1>, scalar_prefetch = 0 : i64, scratch_operands = 0 : i64, tpu.core_type = #tpu.core_type<tc>, window_params = [{pipeline_mode = #tpu.pipeline_mode<synchronous>, transform_indices = @transform_0, window_bounds = array<i64: 8, 44>}, {pipeline_mode = #tpu.pipeline_mode<synchronous>, transform_indices = @transform_1, window_bounds = array<i64: 48, 40>}, {pipeline_mode = #tpu.pipeline_mode<synchronous>, transform_indices = @transform_2, window_bounds = array<i64: 16, 34>}]} {
    %c0 = arith.constant 0 : index
    %c0_0 = arith.constant 0 : index
    %0 = vector.load %arg1[%c0, %c0_0] : memref<8x44xf32, #tpu.memory_space<vmem>>, vector<8x44xf32>
    %1 = vector.extract_strided_slice %0 {offsets = [0, 0], sizes = [8, 40], strides = [1, 1]} : vector<8x44xf32> to vector<8x40xf32>
    %2 = vector.extract_strided_slice %0 {offsets = [0, 1], sizes = [8, 40], strides = [1, 1]} : vector<8x44xf32> to vector<8x40xf32>
    %3 = vector.extract_strided_slice %0 {offsets = [0, 2], sizes = [8, 40], strides = [1, 1]} : vector<8x44xf32> to vector<8x40xf32>
    %4 = vector.extract_strided_slice %0 {offsets = [0, 3], sizes = [8, 40], strides = [1, 1]} : vector<8x44xf32> to vector<8x40xf32>
    %5 = vector.extract_strided_slice %0 {offsets = [0, 4], sizes = [8, 40], strides = [1, 1]} : vector<8x44xf32> to vector<8x40xf32>
    %6 = tpu.concatenate %1, %2, %3, %4, %5 in 0 : vector<8x40xf32>, vector<8x40xf32>, vector<8x40xf32>, vector<8x40xf32>, vector<8x40xf32> -> vector<40x40xf32>
    %c0_1 = arith.constant 0 : index
    %c0_2 = arith.constant 0 : index
    %7 = vector.load %arg2[%c0_1, %c0_2] : memref<48x40xf32, #tpu.memory_space<vmem>>, vector<8x40xf32>
    %cst = arith.constant dense<0.000000e+00> : vector<8x40xf32>
    %8 = tpu.matmul %7, %6, %cst {dimension_numbers = #tpu.dot_dimension_numbers<[1], [0], [0], [1], [0, 0, 1, 1], [], []>} : vector<8x40xf32>, vector<40x40xf32>, vector<8x40xf32> -> vector<8x40xf32>
    %c8 = arith.constant 8 : index
    %c0_3 = arith.constant 0 : index
    %9 = vector.load %arg2[%c8, %c0_3] : memref<48x40xf32, #tpu.memory_space<vmem>>, vector<8x2xf32>
    %10 = vector.extract_strided_slice %9 {offsets = [0, 0], sizes = [8, 1], strides = [1, 1]} : vector<8x2xf32> to vector<8x1xf32>
    %11 = vector.extract_strided_slice %9 {offsets = [0, 1], sizes = [8, 1], strides = [1, 1]} : vector<8x2xf32> to vector<8x1xf32>
    %12 = vector.extract_strided_slice %8 {offsets = [0, 0], sizes = [8, 16], strides = [1, 1]} : vector<8x40xf32> to vector<8x16xf32>
    %cst_4 = arith.constant dense<0.000000e+00> : vector<8xf32>
    %13 = vector.multi_reduction <add>, %12, %cst_4 [1] : vector<8x16xf32> to vector<8xf32>
    %14 = vector.shape_cast %13 : vector<8xf32> to vector<8x1xf32>
    %15 = vector.extract_strided_slice %8 {offsets = [0, 20], sizes = [8, 16], strides = [1, 1]} : vector<8x40xf32> to vector<8x16xf32>
    %cst_5 = arith.constant dense<0.000000e+00> : vector<8xf32>
    %16 = vector.multi_reduction <add>, %15, %cst_5 [1] : vector<8x16xf32> to vector<8xf32>
    %17 = vector.shape_cast %16 : vector<8xf32> to vector<8x1xf32>
    %18 = arith.addf %14, %17 : vector<8x1xf32>
    %cst_6 = arith.constant 3.125000e-02 : f32
    %19 = vector.broadcast %cst_6 : f32 to vector<8x1xf32>
    %20 = arith.mulf %18, %19 : vector<8x1xf32>
    %21 = vector.extract_strided_slice %8 {offsets = [0, 0], sizes = [8, 16], strides = [1, 1]} : vector<8x40xf32> to vector<8x16xf32>
    %22 = vector.broadcast %20 : vector<8x1xf32> to vector<8x16xf32>
    %23 = arith.subf %21, %22 : vector<8x16xf32>
    %24 = arith.mulf %23, %23 : vector<8x16xf32>
    %cst_7 = arith.constant dense<0.000000e+00> : vector<8xf32>
    %25 = vector.multi_reduction <add>, %24, %cst_7 [1] : vector<8x16xf32> to vector<8xf32>
    %26 = vector.shape_cast %25 : vector<8xf32> to vector<8x1xf32>
    %27 = vector.extract_strided_slice %8 {offsets = [0, 20], sizes = [8, 16], strides = [1, 1]} : vector<8x40xf32> to vector<8x16xf32>
    %28 = vector.broadcast %20 : vector<8x1xf32> to vector<8x16xf32>
    %29 = arith.subf %27, %28 : vector<8x16xf32>
    %30 = arith.mulf %29, %29 : vector<8x16xf32>
    %cst_8 = arith.constant dense<0.000000e+00> : vector<8xf32>
    %31 = vector.multi_reduction <add>, %30, %cst_8 [1] : vector<8x16xf32> to vector<8xf32>
    %32 = vector.shape_cast %31 : vector<8xf32> to vector<8x1xf32>
    %33 = arith.addf %26, %32 : vector<8x1xf32>
    %cst_9 = arith.constant 3.125000e-02 : f32
    %34 = vector.broadcast %cst_9 : f32 to vector<8x1xf32>
    %35 = arith.mulf %33, %34 : vector<8x1xf32>
    %cst_10 = arith.constant 1.000000e-03 : f32
    %36 = vector.broadcast %cst_10 : f32 to vector<8x1xf32>
    %37 = arith.addf %35, %36 : vector<8x1xf32>
    %38 = math.rsqrt %37 : vector<8x1xf32>
    %39 = arith.mulf %10, %38 : vector<8x1xf32>
    %40 = arith.mulf %20, %39 : vector<8x1xf32>
    %41 = arith.subf %11, %40 : vector<8x1xf32>
    %42 = vector.broadcast %39 : vector<8x1xf32> to vector<8x40xf32>
    %43 = arith.mulf %8, %42 : vector<8x40xf32>
    %44 = vector.broadcast %41 : vector<8x1xf32> to vector<8x40xf32>
    %45 = arith.addf %43, %44 : vector<8x40xf32>
    %cst_11 = arith.constant 0.000000e+00 : f32
    %46 = vector.broadcast %cst_11 : f32 to vector<8x40xf32>
    %47 = arith.maximumf %45, %46 : vector<8x40xf32>
    %cst_12 = arith.constant 0.000000e+00 : f32
    %48 = vector.broadcast %cst_12 : f32 to vector<8x1xf32>
    %49 = vector.extract_strided_slice %47 {offsets = [0, 0], sizes = [8, 16], strides = [1, 1]} : vector<8x40xf32> to vector<8x16xf32>
    %50 = vector.extract_strided_slice %47 {offsets = [0, 20], sizes = [8, 16], strides = [1, 1]} : vector<8x40xf32> to vector<8x16xf32>
    %cst_13 = arith.constant 0.000000e+00 : f32
    %51 = vector.broadcast %cst_13 : f32 to vector<8x2xf32>
    %52 = tpu.concatenate %48, %49, %48, %48, %50, %48, %51 in 1 : vector<8x1xf32>, vector<8x16xf32>, vector<8x1xf32>, vector<8x1xf32>, vector<8x16xf32>, vector<8x1xf32>, vector<8x2xf32> -> vector<8x38xf32>
    %53 = vector.extract_strided_slice %52 {offsets = [0, 0], sizes = [8, 36], strides = [1, 1]} : vector<8x38xf32> to vector<8x36xf32>
    %54 = vector.extract_strided_slice %52 {offsets = [0, 1], sizes = [8, 36], strides = [1, 1]} : vector<8x38xf32> to vector<8x36xf32>
    %55 = vector.extract_strided_slice %52 {offsets = [0, 2], sizes = [8, 36], strides = [1, 1]} : vector<8x38xf32> to vector<8x36xf32>
    %56 = tpu.concatenate %53, %54, %55 in 0 : vector<8x36xf32>, vector<8x36xf32>, vector<8x36xf32> -> vector<24x36xf32>
    %c16 = arith.constant 16 : index
    %c0_14 = arith.constant 0 : index
    %57 = vector.load %arg2[%c16, %c0_14] : memref<48x40xf32, #tpu.memory_space<vmem>>, vector<16x24xf32>
    %cst_15 = arith.constant dense<0.000000e+00> : vector<16x36xf32>
    %58 = tpu.matmul %57, %56, %cst_15 {dimension_numbers = #tpu.dot_dimension_numbers<[1], [0], [0], [1], [0, 0, 1, 1], [], []>} : vector<16x24xf32>, vector<24x36xf32>, vector<16x36xf32> -> vector<16x36xf32>
    %c32 = arith.constant 32 : index
    %c0_16 = arith.constant 0 : index
    %59 = vector.load %arg2[%c32, %c0_16] : memref<48x40xf32, #tpu.memory_space<vmem>>, vector<16x2xf32>
    %60 = vector.extract_strided_slice %59 {offsets = [0, 0], sizes = [16, 1], strides = [1, 1]} : vector<16x2xf32> to vector<16x1xf32>
    %61 = vector.extract_strided_slice %59 {offsets = [0, 1], sizes = [16, 1], strides = [1, 1]} : vector<16x2xf32> to vector<16x1xf32>
    %62 = vector.extract_strided_slice %58 {offsets = [0, 0], sizes = [16, 16], strides = [1, 1]} : vector<16x36xf32> to vector<16x16xf32>
    %cst_17 = arith.constant dense<0.000000e+00> : vector<16xf32>
    %63 = vector.multi_reduction <add>, %62, %cst_17 [1] : vector<16x16xf32> to vector<16xf32>
    %64 = vector.shape_cast %63 : vector<16xf32> to vector<16x1xf32>
    %65 = vector.extract_strided_slice %58 {offsets = [0, 18], sizes = [16, 16], strides = [1, 1]} : vector<16x36xf32> to vector<16x16xf32>
    %cst_18 = arith.constant dense<0.000000e+00> : vector<16xf32>
    %66 = vector.multi_reduction <add>, %65, %cst_18 [1] : vector<16x16xf32> to vector<16xf32>
    %67 = vector.shape_cast %66 : vector<16xf32> to vector<16x1xf32>
    %68 = arith.addf %64, %67 : vector<16x1xf32>
    %cst_19 = arith.constant 3.125000e-02 : f32
    %69 = vector.broadcast %cst_19 : f32 to vector<16x1xf32>
    %70 = arith.mulf %68, %69 : vector<16x1xf32>
    %71 = vector.extract_strided_slice %58 {offsets = [0, 0], sizes = [16, 16], strides = [1, 1]} : vector<16x36xf32> to vector<16x16xf32>
    %72 = vector.broadcast %70 : vector<16x1xf32> to vector<16x16xf32>
    %73 = arith.subf %71, %72 : vector<16x16xf32>
    %74 = arith.mulf %73, %73 : vector<16x16xf32>
    %cst_20 = arith.constant dense<0.000000e+00> : vector<16xf32>
    %75 = vector.multi_reduction <add>, %74, %cst_20 [1] : vector<16x16xf32> to vector<16xf32>
    %76 = vector.shape_cast %75 : vector<16xf32> to vector<16x1xf32>
    %77 = vector.extract_strided_slice %58 {offsets = [0, 18], sizes = [16, 16], strides = [1, 1]} : vector<16x36xf32> to vector<16x16xf32>
    %78 = vector.broadcast %70 : vector<16x1xf32> to vector<16x16xf32>
    %79 = arith.subf %77, %78 : vector<16x16xf32>
    %80 = arith.mulf %79, %79 : vector<16x16xf32>
    %cst_21 = arith.constant dense<0.000000e+00> : vector<16xf32>
    %81 = vector.multi_reduction <add>, %80, %cst_21 [1] : vector<16x16xf32> to vector<16xf32>
    %82 = vector.shape_cast %81 : vector<16xf32> to vector<16x1xf32>
    %83 = arith.addf %76, %82 : vector<16x1xf32>
    %cst_22 = arith.constant 3.125000e-02 : f32
    %84 = vector.broadcast %cst_22 : f32 to vector<16x1xf32>
    %85 = arith.mulf %83, %84 : vector<16x1xf32>
    %cst_23 = arith.constant 1.000000e-03 : f32
    %86 = vector.broadcast %cst_23 : f32 to vector<16x1xf32>
    %87 = arith.addf %85, %86 : vector<16x1xf32>
    %88 = math.rsqrt %87 : vector<16x1xf32>
    %89 = arith.mulf %60, %88 : vector<16x1xf32>
    %90 = arith.mulf %70, %89 : vector<16x1xf32>
    %91 = arith.subf %61, %90 : vector<16x1xf32>
    %92 = vector.broadcast %89 : vector<16x1xf32> to vector<16x36xf32>
    %93 = arith.mulf %58, %92 : vector<16x36xf32>
    %94 = vector.broadcast %91 : vector<16x1xf32> to vector<16x36xf32>
    %95 = arith.addf %93, %94 : vector<16x36xf32>
    %cst_24 = arith.constant 0.000000e+00 : f32
    %96 = vector.broadcast %cst_24 : f32 to vector<16x36xf32>
    %97 = arith.maximumf %95, %96 : vector<16x36xf32>
    %98 = vector.extract_strided_slice %97 {offsets = [0, 0], sizes = [16, 16], strides = [1, 1]} : vector<16x36xf32> to vector<16x16xf32>
    %99 = vector.extract_strided_slice %97 {offsets = [0, 18], sizes = [16, 16], strides = [1, 1]} : vector<16x36xf32> to vector<16x16xf32>
    %100 = vector.extract_strided_slice %98 {offsets = [0, 0], sizes = [16, 10], strides = [1, 1]} : vector<16x16xf32> to vector<16x10xf32>
    %cst_25 = arith.constant dense<0.000000e+00> : vector<16xf32>
    %101 = vector.multi_reduction <add>, %100, %cst_25 [1] : vector<16x10xf32> to vector<16xf32>
    %102 = vector.shape_cast %101 : vector<16xf32> to vector<16x1xf32>
    %cst_26 = arith.constant 1.000000e+01 : f32
    %103 = vector.broadcast %cst_26 : f32 to vector<16x1xf32>
    %104 = arith.divf %102, %103 : vector<16x1xf32>
    %105 = vector.extract_strided_slice %99 {offsets = [0, 0], sizes = [16, 10], strides = [1, 1]} : vector<16x16xf32> to vector<16x10xf32>
    %cst_27 = arith.constant dense<0.000000e+00> : vector<16xf32>
    %106 = vector.multi_reduction <add>, %105, %cst_27 [1] : vector<16x10xf32> to vector<16xf32>
    %107 = vector.shape_cast %106 : vector<16xf32> to vector<16x1xf32>
    %cst_28 = arith.constant 1.000000e+01 : f32
    %108 = vector.broadcast %cst_28 : f32 to vector<16x1xf32>
    %109 = arith.divf %107, %108 : vector<16x1xf32>
    %110 = tpu.concatenate %98, %99, %104, %109 in 1 : vector<16x16xf32>, vector<16x16xf32>, vector<16x1xf32>, vector<16x1xf32> -> vector<16x34xf32>
    %c0_29 = arith.constant 0 : index
    %c0_30 = arith.constant 0 : index
    %111 = vector.load %arg3[%c0_29, %c0_30] : memref<16x34xf32, #tpu.memory_space<vmem>>, vector<16x34xf32>
    tpu.vector_store %arg3[%c0_29, %c0_30], %110 {strides = array<i32>} : memref<16x34xf32, #tpu.memory_space<vmem>>, vector<16x34xf32>,
    return
  }
  func.func @transform_0(%arg0: i32) -> (i32, i32) {
    %c0_i32 = arith.constant 0 : i32
    %c0_i32_0 = arith.constant 0 : i32
    %c0_i32_1 = arith.constant 0 : i32
    return %c0_i32, %c0_i32_0 : i32, i32
  }
  func.func @transform_1(%arg0: i32) -> (i32, i32) {
    %c0_i32 = arith.constant 0 : i32
    %c0_i32_0 = arith.constant 0 : i32
    %c0_i32_1 = arith.constant 0 : i32
    return %c0_i32, %c0_i32_0 : i32, i32
  }
  func.func @transform_2(%arg0: i32) -> (i32, i32) {
    %c0_i32 = arith.constant 0 : i32
    %c0_i32_0 = arith.constant 0 : i32
    %c0_i32_1 = arith.constant 0 : i32
    return %c0_i32, %c0_i32_0 : i32, i32
  }
}

</mosaic_0001>

<bundles_post_ra>
// kernel: block_fcn_forward.1
= control target key start
LH: loop header
LB: loop body
LE: loop exit
PB: predicated region body
PF: predicated region fallthrough
CT: control target
= control target key end

     0   :  { %s367_s11 = smov 124   ;;  %s368_s12 = smov 126   ;;  %vm26_vm0 = vcmask 326656   ;;  %vm51_vm1 = vcmask 130048   ;;  %v372_v19 = vmov 0   ;;  %v374_v35 = vmov 1   ;;  %s471_s0 = inlined_call_operand.vmem [shape: f32[8,44], index: 0, kind: input, shape index: {}]   ;;  %s472_s1 = inlined_call_operand.vmem [shape: f32[48,40], index: 1, kind: input, shape index: {}]   ;;  %s473_s2 = inlined_call_operand.vmem [shape: f32[16,34], index: 2, kind: output, shape index: {}]  }
   0x1   :  { %v11_v0 = vld [vmem:[%s471_s0] sm:$0xff]  ;;  %s369_s13 = smov 125   ;;  %s370_s14 = smov 127   ;;  %353 = vset.pattern.permute.xlu0 %v372_v19  ;;  %v50_v30 = vld [vmem:[%s472_s1 + $0x8] sm:$0xff]  ;;  %354 = vset.pattern.permute.xlu1 %v374_v35  ;;  %vm116_vm5 = vcmask 7168   ;;  %vm118_vm6 = vcmask 138240  }
   0x2   :  { %22 = vrot.lane.b32.xlu0 %v11_v0, %s367_s11  ;;  %16 = vrot.lane.b32.xlu1 %v11_v0, %s368_s12  ;;  %v25_v5 = vld [vmem:[%s472_s1] sm:$0xff]  ;;  %s371_s16 = smov 108   ;;  %s373_s19 = smov 1   ;;  %vm120_vm7 = vcmask 146432   ;;  %vm122_vm8 = vcmask 154624   ;;  %vm124_vm9 = vcmask 285696  }
   0x3   :  { %357 = vset.pattern.permute.xlu2 %v374_v35  ;;  %vm126_vm10 = vcmask 293888   ;;  %v135_v53 = vld [vmem:[%s472_s1 + $0x10] sm:$0xff]  ;;  %vm137_vm11 = vcmask 195584   ;;  %v136_v54 = vld [vmem:[%s472_s1 + $0x18] sm:$0xff]  ;;  %s375_s24 = smov 110  }
   0xa   :  { %19 = vrot.lane.b32.xlu0 %v11_v0, %s369_s13  ;;  %13 = vrot.lane.b32.xlu1 %v11_v0, %s370_s14 }
  0x74   :  { %v23_v1 = vpop.permute.xlu0 %22  ;;  %v17_v2 = vpop.permute.xlu1 %16 }
  0x75   :  { %41 = vmatpush.msra.mxu0 %v23_v1 }
  0x7c   :  { %v20_v3 = vpop.permute.xlu0 %19  ;;  %v14_v4 = vpop.permute.xlu1 %13 }
  0x7d   :  { %42 = vmatpush.msra.mxu0 %v20_v3 }
  0x7f   :  { %43 = vmatpush.msra.mxu0 %v17_v2 }
  0x81   :  { %44 = vmatpush.msra.mxu0 %v14_v4 }
  0x83   :  { %45 = vmatpush.msra.mxu0 %v11_v0 }
  0x84   :  { %336 = vmatmul.msk.f32.vlgmr.msra.gmra.mxu0 %vm26_vm0, %v25_v5 }
 0x101   :  { %v47_v6 = vpop.f32.mrf.mxu0 }
 0x102   :  { %56 = vrot.lane.b32.xlu2 %v47_v6, %s371_s16  ;;  %v52_v7 = vsel %vm51_vm1, %v47_v6, 0.0 }
 0x12b   :  { %53 = vadd.xlane.f32.xlu2 %v52_v7 }
 0x15c   :  { %v57_v8 = vpop.permute.xlu2 %56 }
 0x15d   :  { %v59_v9 = vsel %vm51_vm1, %v57_v8, 0.0 }
 0x15e   :  { %60 = vadd.xlane.f32.xlu0 %v59_v9 }
 0x19e   :  { %v54_v10 = vpop.xlane.xlu2 %53 }
 0x1d1   :  { %v61_v11 = vpop.xlane.xlu0 %60 }
 0x1d2   :  { %v62_v12 = vadd.f32 %v61_v11, %v54_v10 }
 0x1d4   :  { %v63_v13 = vmul.f32 0.03125, %v62_v12 }
 0x1d6   :  { %v64_v14 = vsub.f32 %v47_v6, %v63_v13 }
 0x1d8   :  { %v65_v15 = vmul.f32 %v64_v14, %v64_v14 }
 0x1da   :  { %70 = vrot.lane.b32.xlu1 %v65_v15, %s371_s16  ;;  %v66_v16 = vsel %vm51_vm1, %v65_v15, 0.0 }
 0x204   :  { %67 = vadd.xlane.f32.xlu1 %v66_v16 }
 0x24c   :  { %v71_v17 = vpop.permute.xlu1 %70 }
 0x24d   :  { %v73_v18 = vsel %vm51_vm1, %v71_v17, 0.0 }
 0x24e   :  { %74 = vadd.xlane.f32.xlu2 %v73_v18 }
 0x277   :  { %v68_v20 = vpop.xlane.xlu1 %67 }
 0x2c1   :  { %v75_v21 = vpop.xlane.xlu2 %74 }
 0x2c2   :  { %v76_v22 = vadd.f32 %v75_v21, %v68_v20 }
 0x2c4   :  { %v77_v23 = vmul.f32 0.03125, %v76_v22 }
 0x2c6   :  { %v78_v24 = vadd.f32 0.001, %v77_v23 }
 0x2c8   :  { %359 = vrsqrt.f32 %v78_v24  ;;  %vm85_vm3 = vweird.f32 %v78_v24 }
 0x2ce   :  { %v360_v25 = vpop.eup %359 }
 0x2cf   :  { %v80_v26 = vmul.f32 %v360_v25, %v78_v24  ;;  %vm86_vm2 = vweird.f32 %v360_v25 }
 0x2d0   :  { %vm87_vm4 = vmor %vm85_vm3, %vm86_vm2  ;;  %vm283_vm3 = vcmask 80896  }
 0x2d1   :  { %v81_v27 = vmul.f32 %v360_v25, %v80_v26 }
 0x2d3   :  { %v82_v28 = vmul.f32 0.5, %v81_v27 }
 0x2d5   :  { %v83_v29 = vsub.f32 1.5, %v82_v28 }
 0x2d7   :  { %v84_v31 = vmul.f32 %v360_v25, %v83_v29 }
 0x2d9   :  { %v88_v32 = vsel %vm87_vm4, %v360_v25, %v84_v31 }
 0x2da   :  { %v89_v33 = vmul.f32 %v88_v32, %v50_v30 }
 0x2dc   :  { %98 = vperm.xlu0 %353, %v89_v33   ;;  %v90_v34 = vmul.f32 %v89_v33, %v63_v13 }
 0x2de   :  { %92 = vrot.lane.b32.xlu2 %v90_v34, %s373_s19 }
 0x2e4   :  { %358 = vset.pattern.permute.xlu0 %v374_v35 }
 0x338   :  { %v93_v36 = vpop.permute.xlu2 %92 }
 0x339   :  { %v95_v37 = vsub.f32 %v50_v30, %v93_v36 }
 0x33b   :  { %104 = vperm.xlu1 %354, %v95_v37   ;;  %v167_v37 = vld [vmem:[%s472_s1 + $0x20] sm:$0xff] }
 0x343   :  { %355 = vset.pattern.permute.xlu1 %v372_v19 }
 0x34e   :  { %v99_v38 = vpop.permute.xlu0 %98 }
 0x34f   :  { %v101_v39 = vmul.f32 %v99_v38, %v47_v6 }
 0x3ad   :  { %v105_v40 = vpop.permute.xlu1 %104 }
 0x3ae   :  { %v107_v41 = vadd.f32 %v105_v40, %v101_v39 }
 0x3b0   :  { %v108_v42 = vmax.f32 %v107_v41, 0.0 }
 0x3b2   :  { %110 = vrot.lane.b32.xlu2 %v108_v42, %s373_s19 }
 0x3ba   :  { %113 = vrot.lane.b32.xlu2 %v108_v42, %s370_s14 }
 0x40c   :  { %v111_v43 = vpop.permute.xlu2 %110 }
 0x40d   :  { %v117_v44 = vsel %vm116_vm5, 0.0, %v111_v43  ;;  %vm323_vm5 = vcmask 261120  }
 0x40e   :  { %v119_v45 = vsel %vm118_vm6, %v117_v44, 0.0  ;;  %v168_v44 = vld [vmem:[%s472_s1 + $0x28] sm:$0xff]  ;;  %vm326_vm6 = vcmask 269312  }
 0x40f   :  { %v121_v46 = vsel %vm120_vm7, %v119_v45, 0.0  ;;  %vm329_vm7 = vcmask 277504  }
 0x414   :  { %v114_v47 = vpop.permute.xlu2 %113 }
 0x415   :  { %v123_v48 = vsel %vm122_vm8, %v121_v46, %v114_v47 }
 0x416   :  { %v125_v49 = vsel %vm124_vm9, %v123_v48, 0.0 }
 0x417   :  { %v127_v50 = vsel %vm126_vm10, %v125_v49, 0.0 }
 0x418   :  { %129 = vrot.lane.b32.xlu2 %v127_v50, %s370_s14  ;;  %132 = vrot.lane.b32.xlu1 %v127_v50, %s368_s12 }
 0x472   :  { %v130_v52 = vpop.permute.xlu2 %129 }
 0x48a   :  { %v133_v51 = vpop.permute.xlu1 %132 }
 0x48b   :  { %157 = vmatpush.msra.mxu1 %v133_v51  ;;  %340 = vmatpush.msra.mxu2 %v133_v51 }
 0x48d   :  { %158 = vmatpush.msra.mxu1 %v130_v52  ;;  %341 = vmatpush.msra.mxu2 %v130_v52 }
 0x48f   :  { %337 = vmatpush.msk.msra.mxu1 %vm126_vm10, %v125_v49  ;;  %342 = vmatpush.msk.msra.mxu2 %vm126_vm10, %v125_v49 }
 0x490   :  { %338 = vmatmul.msk.f32.vlgmr.msra.gmra.mxu1 %vm137_vm11, %v135_v53  ;;  %339 = vmatmul.msk.f32.vlgmr.msra.gmra.mxu2 %vm137_vm11, %v136_v54 }
 0x50d   :  { %v424_v55 = vpop.f32.mrf.mxu1 }
 0x50e   :  { %177 = vrot.lane.b32.xlu0 %v424_v55, %s375_s24  ;;  %v169_v56 = vsel %vm51_vm1, %v424_v55, 0.0 }
 0x50f   :  { %170 = vadd.xlane.f32.xlu2 %v169_v56 }
 0x513   :  { %v430_v57 = vpop.f32.mrf.mxu2 }
 0x514   :  { %179 = vrot.lane.b32.xlu1 %v430_v57, %s375_s24  ;;  %v172_v58 = vsel %vm51_vm1, %v430_v57, 0.0 }
 0x538   :  { %173 = vadd.xlane.f32.xlu0 %v172_v58 }
 0x580   :  { %v178_v59 = vpop.permute.xlu0 %177 }
 0x581   :  { %v183_v60 = vsel %vm51_vm1, %v178_v59, 0.0 }
 0x582   :  { %184 = vadd.xlane.f32.xlu1 %v183_v60  ;;  %v171_v63 = vpop.xlane.xlu2 %170 }
 0x586   :  { %v180_v61 = vpop.permute.xlu1 %179 }
 0x587   :  { %v186_v62 = vsel %vm51_vm1, %v180_v61, 0.0 }
 0x588   :  { %187 = vadd.xlane.f32.xlu2 %v186_v62 }
 0x5ab   :  { %v174_v4 = vpop.xlane.xlu0 %173 }
 0x5f5   :  { %v185_v0 = vpop.xlane.xlu1 %184 }
 0x5f6   :  { %v189_v1 = vadd.f32 %v185_v0, %v171_v63 }
 0x5f8   :  { %v191_v2 = vmul.f32 0.03125, %v189_v1 }
 0x5fa   :  { %v193_v3 = vsub.f32 %v424_v55, %v191_v2 }
 0x5fb   :  { %v188_v5 = vpop.xlane.xlu2 %187 }
 0x5fc   :  { %v195_v6 = vmul.f32 %v193_v3, %v193_v3  ;;  %v190_v7 = vadd.f32 %v188_v5, %v174_v4 }
 0x5fe   :  { %v192_v8 = vmul.f32 0.03125, %v190_v7  ;;  %205 = vrot.lane.b32.xlu0 %v195_v6, %s375_s24  ;;  %v197_v9 = vsel %vm51_vm1, %v195_v6, 0.0 }
 0x5ff   :  { %198 = vadd.xlane.f32.xlu2 %v197_v9 }
 0x600   :  { %v194_v10 = vsub.f32 %v430_v57, %v192_v8 }
 0x602   :  { %v196_v11 = vmul.f32 %v194_v10, %v194_v10 }
 0x604   :  { %207 = vrot.lane.b32.xlu1 %v196_v11, %s375_s24  ;;  %v200_v12 = vsel %vm51_vm1, %v196_v11, 0.0 }
 0x607   :  { %201 = vadd.xlane.f32.xlu2 %v200_v12 }
 0x670   :  { %v206_v13 = vpop.permute.xlu0 %205 }
 0x671   :  { %v211_v14 = vsel %vm51_vm1, %v206_v13, 0.0 }
 0x672   :  { %212 = vadd.xlane.f32.xlu0 %v211_v14  ;;  %v199_v17 = vpop.xlane.xlu2 %198 }
 0x676   :  { %v208_v15 = vpop.permute.xlu1 %207 }
 0x677   :  { %v214_v16 = vsel %vm51_vm1, %v208_v15, 0.0 }
 0x678   :  { %215 = vadd.xlane.f32.xlu2 %v214_v16 }
 0x67a   :  { %v202_v18 = vpop.xlane.xlu2 %201 }
 0x6e5   :  { %v213_v19 = vpop.xlane.xlu0 %212 }
 0x6e6   :  { %v217_v20 = vadd.f32 %v213_v19, %v199_v17 }
 0x6e8   :  { %v219_v21 = vmul.f32 0.03125, %v217_v20 }
 0x6ea   :  { %v221_v22 = vadd.f32 0.001, %v219_v21 }
 0x6eb   :  { %v216_v23 = vpop.xlane.xlu2 %215 }
 0x6ec   :  { %361 = vrsqrt.f32 %v221_v22  ;;  %v218_v24 = vadd.f32 %v216_v23, %v202_v18  ;;  %vm229_vm13 = vweird.f32 %v221_v22 }
 0x6ee   :  { %v220_v25 = vmul.f32 0.03125, %v218_v24 }
 0x6f0   :  { %v222_v26 = vadd.f32 0.001, %v220_v25 }
 0x6f2   :  { %v362_v27 = vpop.eup %361  ;;  %363 = vrsqrt.f32 %v222_v26  ;;  %vm239_vm0 = vweird.f32 %v222_v26 }
 0x6f3   :  { %v224_v28 = vmul.f32 %v362_v27, %v221_v22  ;;  %vm230_vm12 = vweird.f32 %v362_v27 }
 0x6f4   :  { %vm231_vm14 = vmor %vm229_vm13, %vm230_vm12 }
 0x6f5   :  { %v225_v29 = vmul.f32 %v362_v27, %v224_v28 }
 0x6f7   :  { %v226_v30 = vmul.f32 0.5, %v225_v29 }
 0x6f8   :  { %v364_v31 = vpop.eup %363 }
 0x6f9   :  { %v227_v32 = vsub.f32 1.5, %v226_v30  ;;  %v234_v33 = vmul.f32 %v364_v31, %v222_v26  ;;  %vm240_vm15 = vweird.f32 %v364_v31 }
 0x6fa   :  { %vm241_vm2 = vmor %vm239_vm0, %vm240_vm15 }
 0x6fb   :  { %v228_v34 = vmul.f32 %v362_v27, %v227_v32  ;;  %v235_v36 = vmul.f32 %v364_v31, %v234_v33 }
 0x6fd   :  { %v236_v38 = vmul.f32 0.5, %v235_v36  ;;  %v232_v39 = vsel %vm231_vm14, %v362_v27, %v228_v34 }
 0x6fe   :  { %v243_v40 = vmul.f32 %v232_v39, %v167_v37 }
 0x6ff   :  { %v237_v41 = vsub.f32 1.5, %v236_v38 }
 0x700   :  { %v245_v42 = vmul.f32 %v243_v40, %v191_v2 }
 0x701   :  { %v238_v43 = vmul.f32 %v364_v31, %v237_v41 }
 0x702   :  { %249 = vrot.lane.b32.xlu1 %v245_v42, %s373_s19 }
 0x703   :  { %v242_v45 = vsel %vm241_vm2, %v364_v31, %v238_v43 }
 0x704   :  { %v244_v46 = vmul.f32 %v242_v45, %v168_v44 }
 0x706   :  { %v246_v47 = vmul.f32 %v244_v46, %v192_v8 }
 0x708   :  { %251 = vrot.lane.b32.xlu2 %v246_v47, %s373_s19 }
 0x70a   :  { %259 = vperm.xlu1 %355, %v243_v40  }
 0x712   :  { %264 = vperm.xlu1 %355, %v244_v46  }
 0x71a   :  { %356 = vset.pattern.permute.xlu1 %v374_v35 }
 0x762   :  { %v252_v48 = vpop.permute.xlu2 %251 }
 0x763   :  { %v256_v49 = vsub.f32 %v168_v44, %v252_v48 }
 0x765   :  { %276 = vperm.xlu2 %357, %v256_v49  }
 0x774   :  { %v250_v50 = vpop.permute.xlu1 %249 }
 0x775   :  { %v255_v51 = vsub.f32 %v167_v37, %v250_v50 }
 0x777   :  { %271 = vperm.xlu1 %356, %v255_v51  }
 0x77c   :  { %v260_v52 = vpop.permute.xlu1 %259 }
 0x77d   :  { %v267_v60 = vmul.f32 %v260_v52, %v424_v55  ;;  %v376_v55 = vmov 10.0  }
 0x77e   :  { %365 = vrcp.f32 %v376_v55 }
 0x784   :  { %v265_v53 = vpop.permute.xlu1 %264  ;;  %v366_v4 = vpop.eup %365 }
 0x785   :  { %v268_v54 = vmul.f32 %v265_v53, %v430_v57  ;;  %v291_v5 = vmul.f32 10.0, %v366_v4  ;;  %vm295_vm4 = vweird.f32 %v366_v4 }
 0x787   :  { %v292_v6 = vsub.f32 1.0, %v291_v5 }
 0x789   :  { %v293_v8 = vmul.f32 %v366_v4, %v292_v6 }
 0x78b   :  { %v294_v10 = vadd.f32 %v366_v4, %v293_v8 }
 0x78d   :  { %v296_v12 = vsel %vm295_vm4, %v366_v4, %v294_v10 }
 0x7bf   :  { %v277_v56 = vpop.permute.xlu2 %276 }
 0x7c0   :  { %v280_v58 = vadd.f32 %v277_v56, %v268_v54 }
 0x7c2   :  { %v282_v59 = vmax.f32 %v280_v58, 0.0 }
 0x7c4   :  { %303 = vrot.lane.b32.xlu2 %v282_v59, %s375_s24  ;;  %v287_v63 = vsel %vm283_vm3, %v282_v59, 0.0 }
 0x7e9   :  { %v272_v61 = vpop.permute.xlu1 %271 }
 0x7ea   :  { %v279_v35 = vadd.f32 %v272_v61, %v267_v60 }
 0x7ec   :  { %v281_v62 = vmax.f32 %v279_v35, 0.0 }
 0x7ed   :  { %288 = vadd.xlane.f32.xlu2 %v287_v63 }
 0x7ee   :  { %301 = vrot.lane.b32.xlu0 %v281_v62, %s375_s24  ;;  %v284_v0 = vsel %vm283_vm3, %v281_v62, 0.0 }
 0x7ef   :  { %285 = vadd.xlane.f32.xlu1 %v284_v0 }
 0x805   :  { %317 = vrot.lane.b32.xlu2 %v282_v59, %s368_s12 }
 0x81e   :  { %v304_v57 = vpop.permute.xlu2 %303 }
 0x81f   :  { %v310_v1 = vsel %vm283_vm3, %v304_v57, 0.0 }
 0x820   :  { %311 = vadd.xlane.f32.xlu1 %v310_v1 }
 0x839   :  { %315 = vrot.lane.b32.xlu1 %v281_v62, %s368_s12 }
 0x860   :  { %v302_v2 = vpop.permute.xlu0 %301  ;;  %v289_v7 = vpop.xlane.xlu2 %288 }
 0x861   :  { %v307_v3 = vsel %vm283_vm3, %v302_v2, 0.0  ;;  %v298_v14 = vmul.f32 %v296_v12, %v289_v7 }
 0x862   :  { %308 = vadd.xlane.f32.xlu0 %v307_v3  ;;  %v286_v9 = vpop.xlane.xlu1 %285 }
 0x863   :  { %v297_v21 = vmul.f32 %v296_v12, %v286_v9 }
 0x868   :  { %v318_v11 = vpop.permute.xlu2 %317 }
 0x869   :  { %v322_v13 = vsel %vm51_vm1, %v282_v59, %v318_v11 }
 0x86a   :  { %v325_v17 = vsel %vm323_vm5, %v322_v13, %v298_v14 }
 0x893   :  { %v312_v15 = vpop.xlane.xlu1 %311 }
 0x894   :  { %v314_v16 = vmul.f32 %v312_v15, %v296_v12 }
 0x896   :  { %v328_v18 = vsel %vm326_vm6, %v325_v17, %v314_v16 }
 0x897   :  { %331 = vst.msk [vmem:[%s473_s2 + $0x8] sm:$0xff] %vm329_vm7, %v328_v18 }
 0x8ab   :  { %v316_v19 = vpop.permute.xlu1 %315 }
 0x8ac   :  { %v321_v20 = vsel %vm51_vm1, %v281_v62, %v316_v19 }
 0x8ad   :  { %v324_v24 = vsel %vm323_vm5, %v321_v20, %v297_v21 }
 0x8d5   :  { %v309_v22 = vpop.xlane.xlu0 %308 }
 0x8d6   :  { %v313_v23 = vmul.f32 %v309_v22, %v296_v12 }
 0x8d8   :  { %v327_v25 = vsel %vm326_vm6, %v324_v24, %v313_v23 }
 0x8d9   :  { %330 = vst.msk [vmem:[%s473_s2] sm:$0xff] %vm329_vm7, %v327_v25 }

</bundles_post_ra>
